<compile_context>
chip_gen: v6e
topology: v6e:2x2x1
jax: 0.10.0
libtpu: 0.0.40
codegen_flags: <defaults>
</compile_context>

<pallas_src>
import jax
import jax.numpy as jnp
from jax.experimental import pallas as pl
from jax.experimental.pallas import tpu as pltpu


PACK = 16  # original rows packed per lane-dense row (PACK * N(=8) = 128 lanes)


def packed_linear_add_kernel(xp_ref, wbd_ref, b_ref, yp_ref, o_ref):
    # v1 = x * 1 is a no-op; v3 = (v1 @ W^T) + b + y computed as one fused
    # (TM,256)x(256,128) MXU matmul + two VPU adds on a 128-lane-dense tile.
    o_ref[...] = (
        jnp.dot(xp_ref[...], wbd_ref[...], preferred_element_type=jnp.float32)
        + b_ref[...]
        + yp_ref[...]
    ).astype(o_ref.dtype)


def _round_up(v, m):
    return ((v + m - 1) // m) * m


def model_forward(x, w, b, y):
    """x:(M,K) w:(N,K) b:(N,) y broadcastable to (M,N) -> (M,N) == x*1 @ w.T + b + y"""
    x = jnp.asarray(x, jnp.float32)
    w = jnp.asarray(w, jnp.float32)
    b = jnp.asarray(b, jnp.float32)
    M, K = x.shape
    N, _ = w.shape
    y = jnp.broadcast_to(jnp.asarray(y, jnp.float32), (M, N))

    # Pad M only to a multiple of PACK so the lane-dense reshape is legal.
    # TODO(synk): for M % 16 != 0 this materializes a padded copy; a plain-JAX
    # tail for the last <16 rows would avoid it.
    m_pad = _round_up(M, PACK)
    if m_pad != M:
        x = jnp.pad(x, ((0, m_pad - M), (0, 0)))
        y = jnp.pad(y, ((0, m_pad - M), (0, 0)))
    MP = m_pad // PACK
    KP = PACK * K   # 256 : packed contraction depth
    NP = PACK * N   # 128 : packed (lane-dense) output width

    # Free row-major reshapes (pure dim merges; no data movement).
    xp = x.reshape(MP, KP)
    yp = y.reshape(MP, NP)

    # Block-diagonal weight (KP, NP): block (p, p) = W^T, off-diagonal blocks
    # are exactly zero so cross-row terms vanish.
    wt = w.T                                                    # (K, N)
    eye = jnp.eye(PACK, dtype=jnp.float32)
    w_bd = jnp.einsum("pq,kn->pkqn", eye, wt).reshape(KP, NP)   # (256, 128)

    b_tiled = jnp.tile(b, PACK).reshape(1, NP)                  # (1, 128)

    # Tile selection (packed rows):
    #  * MP <= 8 : single full-extent block (satisfies the (8,128) rule via
    #    "== full array dim"; nothing to shard anyway).
    #  * else    : at least 2 grid steps (v7x megacore), TM a multiple of 8,
    #    capped at 1024 packed rows (~4 MiB of double-buffered streams).
    TM_CAP = 1024
    if MP <= 8:
        TM = MP
    else:
        TM = min(TM_CAP, _round_up((MP + 1) // 2, 8))
    grid_m = (MP + TM - 1) // TM

    outp = pl.pallas_call(
        packed_linear_add_kernel,
        out_shape=jax.ShapeDtypeStruct((MP, NP), jnp.float32),
        grid_spec=pltpu.PrefetchScalarGridSpec(
            num_scalar_prefetch=0,
            grid=(grid_m,),
            in_specs=[
                pl.BlockSpec((TM, KP), lambda i: (i, 0)),   # packed x row tile
                pl.BlockSpec((KP, NP), lambda i: (0, 0)),   # block-diag weight (grid-invariant)
                pl.BlockSpec((1, NP), lambda i: (0, 0)),    # tiled bias (grid-invariant)
                pl.BlockSpec((TM, NP), lambda i: (i, 0)),   # packed y row tile
            ],
            out_specs=pl.BlockSpec((TM, NP), lambda i: (i, 0)),
        ),
        compiler_params=pltpu.CompilerParams(
            dimension_semantics=("parallel",),
        ),
    )(xp, w_bd, b_tiled, yp)

    out = outp.reshape(m_pad, N)
    if m_pad != M:
        out = out[:M]
    return out


if __name__ == "__main__":
    key = jax.random.PRNGKey(0)
    kx, ky, kw, kb = jax.random.split(key, 4)

    M, K, N = 16, 16, 8  # x:(16,16), Linear(16,8), y:(16,8)

    x = jax.random.normal(kx, (M, K), dtype=jnp.float32)
    y = jax.random.normal(ky, (M, N), dtype=jnp.float32)

    # Deterministic nn.Linear-style init: U(-1/sqrt(in), 1/sqrt(in))
    bound = 1.0 / jnp.sqrt(jnp.float32(K))
    w = jax.random.uniform(kw, (N, K), dtype=jnp.float32, minval=-bound, maxval=bound)
    b = jax.random.uniform(kb, (N,), dtype=jnp.float32, minval=-bound, maxval=bound)

    out = model_forward(x, w, b, y)
    out = jax.block_until_ready(out)

    # Reference check in plain JAX
    ref = (x * 1.0) @ w.T + b + y
    assert out.shape == (M, N)
    assert jnp.allclose(out, ref, atol=1e-5, rtol=1e-5)

    print("KERNEL_OK")
</pallas_src>

<mosaic_0001>
module attributes {stable_mosaic.version = 11 : i64} {
  func.func @packed_linear_add_kernel(%arg0: i32, %arg1: memref<1x256xf32, #tpu.memory_space<vmem>>, %arg2: memref<256x128xf32, #tpu.memory_space<vmem>>, %arg3: memref<1x128xf32, #tpu.memory_space<vmem>>, %arg4: memref<1x128xf32, #tpu.memory_space<vmem>>, %arg5: memref<1x128xf32, #tpu.memory_space<vmem>>) attributes {dimension_semantics = [#tpu.dimension_semantics<parallel>], iteration_bounds = array<i64: 1>, scalar_prefetch = 0 : i64, scratch_operands = 0 : i64, tpu.core_type = #tpu.core_type<tc>, window_params = [{transform_indices = @transform_0, window_bounds = array<i64: 1, 256>}, {pipeline_mode = #tpu.pipeline_mode<synchronous>, transform_indices = @transform_1, window_bounds = array<i64: 256, 128>}, {pipeline_mode = #tpu.pipeline_mode<synchronous>, transform_indices = @transform_2, window_bounds = array<i64: 1, 128>}, {transform_indices = @transform_3, window_bounds = array<i64: 1, 128>}, {transform_indices = @transform_4, window_bounds = array<i64: 1, 128>}]} {
    %c0 = arith.constant 0 : index
    %c0_0 = arith.constant 0 : index
    %0 = vector.load %arg1[%c0, %c0_0] : memref<1x256xf32, #tpu.memory_space<vmem>>, vector<1x256xf32>
    %c0_1 = arith.constant 0 : index
    %c0_2 = arith.constant 0 : index
    %1 = vector.load %arg2[%c0_1, %c0_2] : memref<256x128xf32, #tpu.memory_space<vmem>>, vector<256x128xf32>
    %cst = arith.constant dense<0.000000e+00> : vector<1x128xf32>
    %2 = tpu.matmul %0, %1, %cst {dimension_numbers = #tpu.dot_dimension_numbers<[1], [0], [0], [1], [0, 0, 1, 1], [], []>} : vector<1x256xf32>, vector<256x128xf32>, vector<1x128xf32> -> vector<1x128xf32>
    %c0_3 = arith.constant 0 : index
    %c0_4 = arith.constant 0 : index
    %3 = vector.load %arg3[%c0_3, %c0_4] : memref<1x128xf32, #tpu.memory_space<vmem>>, vector<1x128xf32>
    %4 = arith.addf %2, %3 : vector<1x128xf32>
    %c0_5 = arith.constant 0 : index
    %c0_6 = arith.constant 0 : index
    %5 = vector.load %arg4[%c0_5, %c0_6] : memref<1x128xf32, #tpu.memory_space<vmem>>, vector<1x128xf32>
    %6 = arith.addf %4, %5 : vector<1x128xf32>
    %c0_7 = arith.constant 0 : index
    %c0_8 = arith.constant 0 : index
    %7 = vector.load %arg5[%c0_7, %c0_8] : memref<1x128xf32, #tpu.memory_space<vmem>>, vector<1x128xf32>
    tpu.vector_store %arg5[%c0_7, %c0_8], %6 {strides = array<i32>} : memref<1x128xf32, #tpu.memory_space<vmem>>, vector<1x128xf32>,
    return
  }
  func.func @transform_0(%arg0: i32) -> (i32, i32) {
    %c0_i32 = arith.constant 0 : i32
    %c0_i32_0 = arith.constant 0 : i32
    return %arg0, %c0_i32 : i32, i32
  }
  func.func @transform_1(%arg0: i32) -> (i32, i32) {
    %c0_i32 = arith.constant 0 : i32
    %c0_i32_0 = arith.constant 0 : i32
    %c0_i32_1 = arith.constant 0 : i32
    return %c0_i32, %c0_i32_0 : i32, i32
  }
  func.func @transform_2(%arg0: i32) -> (i32, i32) {
    %c0_i32 = arith.constant 0 : i32
    %c0_i32_0 = arith.constant 0 : i32
    %c0_i32_1 = arith.constant 0 : i32
    return %c0_i32, %c0_i32_0 : i32, i32
  }
  func.func @transform_3(%arg0: i32) -> (i32, i32) {
    %c0_i32 = arith.constant 0 : i32
    %c0_i32_0 = arith.constant 0 : i32
    return %arg0, %c0_i32 : i32, i32
  }
  func.func @transform_4(%arg0: i32) -> (i32, i32) {
    %c0_i32 = arith.constant 0 : i32
    %c0_i32_0 = arith.constant 0 : i32
    return %arg0, %c0_i32 : i32, i32
  }
}

</mosaic_0001>

<bundles_post_ra>
// kernel: tpu_custom_call.1
= control target key start
LH: loop header
LB: loop body
LE: loop exit
PB: predicated region body
PF: predicated region fallthrough
CT: control target
= control target key end

     0   :  { %9 = vsyncpa [#allocation3], 0  ;;  %s329_s0 = inlined_call_operand.hbm [shape: f32[1,256], index: 0, kind: input, shape index: {}]   ;;  %s330_s1 = inlined_call_operand.hbm [shape: f32[256,128], index: 1, kind: input, shape index: {}]   ;;  %s331_s2 = inlined_call_operand.vmem [shape: f32[1,128], index: 2, kind: input, shape index: {}]   ;;  %s332_s3 = inlined_call_operand.vmem [shape: f32[1,128], index: 3, kind: input, shape index: {}]   ;;  %s333_s4 = inlined_call_operand.hbm [shape: f32[1,128], index: 4, kind: output, shape index: {}]  }
   0x1   :  { %10 = vsyncpa [#allocation6], 0 }
   0x2   :  { %11 = vsyncpa [#allocation4], 0  ;;  %s284_s15 = smov [#allocation2]   ;;  %s285_s17 = smov [#allocation5]  }
   0x3   :  { %s18_s16 = sshll.u32 %s284_s15, 4  ;;  %s27_s18 = sshll.u32 %s285_s17, 4  ;;  %s19_s16 = int_to_ptr.vmem [resolvable:$true] %s18_s16  ;;  %s28_s18 = int_to_ptr.vmem [resolvable:$true] %s27_s18 }
   0x4   :  { %s226_s19 = scalar_lea.vmem %s19_s16, 32  ;;  %p231_p1 = scmp.lt.s32.totalorder %s19_s16, %s19_s16 }
   0x5   :  { %p227_p0 = scmp.ne.s32.totalorder %s19_s16, %s226_s19  ;;  %p232_p2 = scmp.lt.s32.totalorder %s226_s19, %s226_s19 }
   0x7   :  { %p233_p3 = por %p232_p2, %p231_p1 }
   0x9   :  { %p234_p4 = pnand %p233_p3, %p227_p0 }
   0xb   :  { %237 = shalt.err (!%p234_p4)
}
   0xc   :  { %21 = dma.hbm_to_vmem [thread:$0]  %s329_s0, 32, %s19_s16, [#allocation3]  }
   0xd   :  { %s246_s22 = scalar_lea.vmem %s28_s18, 4096  ;;  %p251_p6 = scmp.lt.s32.totalorder %s28_s18, %s28_s18 }
   0xe   :  { %p247_p5 = scmp.ne.s32.totalorder %s28_s18, %s246_s22  ;;  %p252_p7 = scmp.lt.s32.totalorder %s246_s22, %s246_s22 }
  0x10   :  { %p253_p8 = por %p252_p7, %p251_p6 }
  0x12   :  { %p254_p9 = pnand %p253_p8, %p247_p5 }
  0x14   :  { %257 = shalt.err (!%p254_p9)
}
  0x15   :  { %s286_s23 = smov 128   ;;  %s287_s24 = smov 8  }
  0x16   :  { %33 = dma.hbm_to_vmem [thread:$0]  %s330_s1, 4096, %s28_s18, [#allocation6], %s286_s23, %s286_s23, %s287_s24  }
  0x17   :  { %278 = dma.done.wait [#allocation3], 32  }
  0x18   :  { %279 = vsyncadd [#allocation3], 4294967264 }
  0x19   :  { %280 = dma.done.wait [#allocation6], 4096  }
  0x1a   :  { %281 = vsyncadd [#allocation6], 4294963200  ;;  %v79_v0 = vlaneseq  ;;  %v76_v1 = vld [vmem:[#allocation5 + $0xf8] sm:$0xff]  ;;  %v75_v3 = vld [vmem:[#allocation5 + $0xf0] sm:$0xff]  ;;  %s288_s29 = smov [#allocation7]  }
  0x1b   :  { %v60_v2 = vld [vmem:[#allocation5 + $0x78] sm:$0xff]  ;;  %178 = vmatprep.subr.mxu0 %v76_v1  ;;  %v59_v4 = vld [vmem:[#allocation5 + $0x70] sm:$0xff]  ;;  %v74_v5 = vld [vmem:[#allocation5 + $0xe8] sm:$0xff]  ;;  %s168_s30 = sshll.u32 %s288_s29, 4  ;;  %s169_s30 = int_to_ptr.vmem [resolvable:$true] %s168_s30 }
  0x1c   :  { %179 = vmatpush3.msra.mxu0 %v60_v2  ;;  %v58_v6 = vld [vmem:[#allocation5 + $0x68] sm:$0xff]  ;;  %v80_v7 = vshrl.u32 %v79_v0, 7  ;;  %v73_v8 = vld [vmem:[#allocation5 + $0xe0] sm:$0xff]  ;;  %v72_v10 = vld [vmem:[#allocation5 + $0xd8] sm:$0xff]  ;;  %s258_s5 = scalar_lea.vmem %s169_s30, 16  ;;  %s262_s6 = scalar_lea.vmem %s169_s30, 32 }
  0x1d   :  { %180 = vmatprep.subr.mxu0 %v75_v3  ;;  %v57_v9 = vld [vmem:[#allocation5 + $0x60] sm:$0xff]  ;;  %v56_v11 = vld [vmem:[#allocation5 + $0x58] sm:$0xff]  ;;  %v71_v13 = vld [vmem:[#allocation5 + $0xd0] sm:$0xff]  ;;  %p259_p10 = scmp.ne.s32.totalorder %s169_s30, %s258_s5  ;;  %p263_p11 = scmp.lt.s32.totalorder %s169_s30, %s169_s30 }
  0x1e   :  { %181 = vmatpush3.msra.mxu0 %v59_v4  ;;  %v85_v12 = vsub.s32 1, %v80_v7  ;;  %v55_v14 = vld [vmem:[#allocation5 + $0x50] sm:$0xff]  ;;  %v70_v15 = vld [vmem:[#allocation5 + $0xc8] sm:$0xff]  ;;  %v44_v16 = vld [vmem:[#allocation2] sm:$0x3]  ;;  %v81_v33 = vsub.s32 0, %v80_v7  ;;  %p264_p12 = scmp.lt.s32.totalorder %s262_s6, %s258_s5 }
  0x1f   :  { %182 = vmatprep.subr.mxu0 %v74_v5  ;;  %v54_v17 = vld [vmem:[#allocation5 + $0x48] sm:$0xff]  ;;  %v69_v19 = vld [vmem:[#allocation5 + $0xc0] sm:$0xff]  ;;  %v68_v21 = vld [vmem:[#allocation5 + $0xb8] sm:$0xff] }
  0x20   :  { %183 = vmatpush3.msra.mxu0 %v58_v6  ;;  %v86_v18 = vrot.slane %v44_v16, %v85_v12  ;;  %v53_v20 = vld [vmem:[#allocation5 + $0x40] sm:$0xff]  ;;  %v52_v22 = vld [vmem:[#allocation5 + $0x38] sm:$0xff]  ;;  %v67_v23 = vld [vmem:[#allocation5 + $0xb0] sm:$0xff]  ;;  %v82_v38 = vrot.slane %v44_v16, %v81_v33  ;;  %p265_p13 = por %p264_p12, %p263_p11 }
  0x21   :  { %184 = vmatprep.subr.mxu0 %v73_v8  ;;  %v51_v24 = vld [vmem:[#allocation5 + $0x30] sm:$0xff]  ;;  %v66_v25 = vld [vmem:[#allocation5 + $0xa8] sm:$0xff]  ;;  %v65_v27 = vld [vmem:[#allocation5 + $0xa0] sm:$0xff] }
  0x22   :  { %185 = vmatpush3.msra.mxu0 %v57_v9  ;;  %153 = vmatprep.mubr.f32.mxu0 %v86_v18  ;;  %v50_v26 = vld [vmem:[#allocation5 + $0x28] sm:$0xff]  ;;  %v49_v28 = vld [vmem:[#allocation5 + $0x20] sm:$0xff]  ;;  %v64_v29 = vld [vmem:[#allocation5 + $0x98] sm:$0xff]  ;;  %p266_p0 = pnand %p265_p13, %p259_p10 }
  0x23   :  { %186 = vmatprep.subr.mxu0 %v72_v10  ;;  %v48_v30 = vld [vmem:[#allocation5 + $0x18] sm:$0xff]  ;;  %v63_v31 = vld [vmem:[#allocation5 + $0x90] sm:$0xff]  ;;  %v62_v34 = vld [vmem:[#allocation5 + $0x88] sm:$0xff] }
  0x24   :  { %187 = vmatpush3.msra.mxu0 %v56_v11  ;;  %v47_v32 = vld [vmem:[#allocation5 + $0x10] sm:$0xff]  ;;  %v46_v35 = vld [vmem:[#allocation5 + $0x8] sm:$0xff]  ;;  %v61_v36 = vld [vmem:[#allocation5 + $0x80] sm:$0xff] }
  0x25   :  { %188 = vmatprep.subr.mxu0 %v71_v13  ;;  %v45_v37 = vld [vmem:[#allocation5] sm:$0xff]  ;;  %v77_v40 = vld [vmem:[%s331_s2] sm:$0x1] }
  0x26   :  { %189 = vmatpush3.msra.mxu0 %v55_v14  ;;  %v159_v43 = vld [vmem:[%s332_s3] sm:$0x1] }
  0x27   :  { %190 = vmatprep.subr.mxu0 %v70_v15 }
  0x28   :  { %191 = vmatpush3.msra.mxu0 %v54_v17 }
  0x29   :  { %192 = vmatprep.subr.mxu0 %v69_v19 }
  0x2a   :  { %193 = vmatpush3.msra.mxu0 %v53_v20 }
  0x2b   :  { %194 = vmatprep.subr.mxu0 %v68_v21 }
  0x2c   :  { %195 = vmatpush3.msra.mxu0 %v52_v22 }
  0x2d   :  { %196 = vmatprep.subr.mxu0 %v67_v23 }
  0x2e   :  { %197 = vmatpush3.msra.mxu0 %v51_v24 }
  0x2f   :  { %198 = vmatprep.subr.mxu0 %v66_v25 }
  0x30   :  { %199 = vmatpush3.msra.mxu0 %v50_v26 }
  0x31   :  { %200 = vmatprep.subr.mxu0 %v65_v27 }
  0x32   :  { %201 = vmatpush3.msra.mxu0 %v49_v28 }
  0x33   :  { %202 = vmatprep.subr.mxu0 %v64_v29 }
  0x34   :  { %203 = vmatpush3.msra.mxu0 %v48_v30 }
  0x35   :  { %204 = vmatprep.subr.mxu0 %v63_v31 }
  0x36   :  { %205 = vmatpush3.msra.mxu0 %v47_v32 }
  0x37   :  { %206 = vmatprep.subr.mxu0 %v62_v34 }
  0x38   :  { %207 = vmatpush3.msra.mxu0 %v46_v35 }
  0x39   :  { %208 = vmatprep.subr.mxu0 %v61_v36 }
  0x3a   :  { %209 = vmatpush3.msra.mxu0 %v45_v37 }
  0x3b   :  { %154 = vmatmul.mubr.f32.vlgmr.msra.gmra.mxu0 %v82_v38 }
  0xfb   :  { %v210_v39 = vpop.f32.mrf.mxu0 }
  0xfd   :  { %v211_v41 = vpop.f32.mrf.mxu0 }
  0xfe   :  { %v212_v42 = vadd.f32 %v211_v41, %v210_v39 }
 0x100   :  { %v156_v44 = vadd.f32 %v212_v42, %v77_v40 }
 0x102   :  { %v160_v45 = vadd.f32 %v159_v43, %v156_v44 }
 0x104   :  { %161 = vst [vmem:[#allocation7] sm:$0x1] %v160_v45 }
 0x105   :  { %269 = shalt.err (!%p266_p0)
}
 0x106   :  { %171 = dma.vmem_to_hbm [thread:$0]  %s169_s30, 16, %s333_s4, [#allocation4]  }
 0x107   :  { %282 = dma.done.wait [#allocation4], 16  }
 0x108   :  { %283 = vsyncadd [#allocation4], 4294967280 }
 0x109   :  { %175 = vsyncpa [#allocation3], 1 }
 0x10a   :  { %176 = vsyncpa [#allocation6], 1 }
 0x10b   :  { %177 = vsyncpa [#allocation4], 1 }

</bundles_post_ra>
